<compile_context>
chip_gen: v5e
topology: v5e:2x2
jax: 0.10.0
libtpu: 0.0.40
codegen_flags: <defaults>
</compile_context>

<pallas_src>
import jax
import jax.numpy as jnp
import numpy as np
from jax.experimental import pallas as pl
from jax.experimental.pallas import tpu as pltpu


# ----------------------------------------------------------- fused MLP kernel
def fused_forward(x, w12_bf16, b12, w_eff_bf16, b_eff):
    """x:(B,cond) f32, w12:(2*cond,cond) bf16, b12:(2,cond) f32,
    w_eff:(cond,N) bf16, b_eff:(N,) f32  ->  (B, N) f32."""
    B, cond = x.shape
    N = w_eff_bf16.shape[1]

    # Batch tiling: pad to a multiple of 16 sublanes (bf16 activation inputs),
    # tile at <=256 rows and let a "parallel" grid split large batches across
    # TensorCores (v7x).  At the small test batch this is a single grid step.
    if B <= 256:
        B_pad = max(16, -(-B // 16) * 16)
        tm = B_pad
    else:
        tm = 256
        B_pad = -(-B // tm) * tm
    grid = (B_pad // tm,)

    if B == B_pad:
        x_p = x                                     # no pad / no slice needed
    else:
        x_p = jnp.zeros((B_pad, cond), x.dtype).at[:B, :].set(x)

    b_eff2d = b_eff.reshape(1, N)

    # VMEM budget: count 2x double-buffering of every gridded input/output and
    # check against v5e's 16 MiB default scoped limit (most conservative of
    # v5e/v6e/v7x).  Fails loudly instead of OOM-ing at Mosaic compile time.
    resident_bytes = 2 * (
        tm * cond * 4            # x tile (f32)
        + (2 * cond) * cond * 2  # packed w1/w2 (bf16)
        + 2 * cond * 4           # packed b1/b2 (f32)
        + cond * N * 2           # W_eff (bf16)
        + N * 4                  # b_eff (f32)
        + tm * N * 4             # out tile (f32)
    )
    assert resident_bytes < 16 * 1024 * 1024, (
        "fused weights/tiles too large for VMEM-resident kernel on v5e; "
        "add a grid over the output dim (re-derive budget with 2x buffering)")

    def kernel(x_ref, w12_ref, b12_ref, weff_ref, beff_ref, o_ref):
        # Row slices of the packed weight buffer: offsets 0 / cond are
        # multiples of 8 sublanes -> aligned loads, no copies.
        w1 = w12_ref[0:cond, :]                 # (cond, cond) bf16
        w2 = w12_ref[cond:2 * cond, :]          # (cond, cond) bf16
        b1 = b12_ref[0:1, :]                    # (1, cond) f32
        b2 = b12_ref[1:2, :]                    # (1, cond) f32

        x_ = x_ref[...]                         # (tm, cond) f32
        # bf16 x bf16 MXU dots, f32 accumulation, f32 bias add + ReLU.
        h = jnp.dot(x_.astype(jnp.bfloat16), w1,
                    preferred_element_type=jnp.float32) + b1
        h = jnp.maximum(h, 0.0)                                 # ReLU(fc1)
        h = jnp.dot(h.astype(jnp.bfloat16), w2,
                    preferred_element_type=jnp.float32) + b2
        h = jnp.maximum(h, 0.0)                                 # ReLU(fc2)
        h = jnp.dot(h.astype(jnp.bfloat16), weff_ref[...],
                    preferred_element_type=jnp.float32) + beff_ref[...]
        o_ref[...] = h.astype(o_ref.dtype)                      # fc3 ∘ conv (folded)

    cost = pl.CostEstimate(
        flops=2 * B_pad * (2 * cond * cond + cond * N),
        transcendentals=0,
        bytes_accessed=(B_pad * cond * 4 + 2 * cond * cond * 2 + 2 * cond * 4
                        + cond * N * 2 + N * 4 + B_pad * N * 4),
    )

    out = pl.pallas_call(
        kernel,
        out_shape=jax.ShapeDtypeStruct((B_pad, N), jnp.float32),
        grid_spec=pltpu.PrefetchScalarGridSpec(
            num_scalar_prefetch=0,
            grid=grid,
            in_specs=[
                pl.BlockSpec((tm, cond), lambda i: (i, 0)),      # x rows
                pl.BlockSpec((2 * cond, cond), lambda i: (0, 0)),  # w1|w2 (bf16)
                pl.BlockSpec((2, cond), lambda i: (0, 0)),         # b1|b2
                pl.BlockSpec((cond, N), lambda i: (0, 0)),         # W_eff (bf16)
                pl.BlockSpec((1, N), lambda i: (0, 0)),            # b_eff
            ],
            out_specs=pl.BlockSpec((tm, N), lambda i: (i, 0)),
        ),
        compiler_params=pltpu.CompilerParams(
            dimension_semantics=("parallel",)),     # megacore split when B is large
        cost_estimate=cost,
    )(x_p, w12_bf16, b12, w_eff_bf16, b_eff2d)

    return out if B == B_pad else out[:B]


# ------------------------------------------------- fold fc3 + conv at init time
def fuse_fc3_conv(w3, b3, conv_w, conv_b, data_size):
    """Precompute W_eff = w3 @ M_conv and b_eff = b3 @ M_conv + repeat(conv_b)."""
    D = data_size
    C = conv_w.shape[0]
    # Conv-as-matrix: run the (biasless) conv over the D*D identity basis images.
    eye = jnp.eye(D * D, dtype=jnp.float32).reshape(D * D, 1, D, D)
    m = jax.lax.conv_general_dilated(
        eye, conv_w, window_strides=(1, 1), padding="SAME",
        dimension_numbers=("NCHW", "OIHW", "NCHW"))            # (D*D, C, D, D)
    m = m.reshape(D * D, C * D * D)                            # conv as linear map
    w_eff = w3 @ m                                             # f32 (cond, C*D*D)
    b_eff = b3 @ m + jnp.repeat(conv_b, D * D)                 # f32 (C*D*D,)
    return w_eff, b_eff


# ------------------------------------------------------------------ full module
def cond_vec2img_forward(x, params):
    B = x.shape[0]
    D = params["data_size"]
    C = params["channels"]
    flat = fused_forward(
        x,
        params["w12_bf16"], params["b12"],
        params["w_eff_bf16"], params["b_eff"],
    )                                           # (B, C*D*D), lane-dense canonical form
    return flat.reshape(B, C, D, D)             # free layout plumbing in wrapper


def init_params(key, cond_size, data_size, channels):
    ks = jax.random.split(key, 8)

    def uni(k, shape, fan_in):
        lim = 1.0 / np.sqrt(fan_in)
        return jax.random.uniform(k, shape, jnp.float32, -lim, lim)

    # Linear weights stored as (in, out) so the kernel does x @ W + b.
    p = {
        "w1": uni(ks[0], (cond_size, cond_size), cond_size),
        "b1": uni(ks[1], (cond_size,), cond_size),
        "w2": uni(ks[2], (cond_size, cond_size), cond_size),
        "b2": uni(ks[3], (cond_size,), cond_size),
        "w3": uni(ks[4], (cond_size, data_size ** 2), cond_size),
        "b3": uni(ks[5], (data_size ** 2,), cond_size),
        "conv_w": uni(ks[6], (channels, 1, 3, 3), 9),
        "conv_b": uni(ks[7], (channels,), 9),
        "data_size": data_size,
        "channels": channels,
    }
    # One-time algebraic fold of fc3 + conv1 (both linear) into W_eff / b_eff.
    w_eff, b_eff = fuse_fc3_conv(p["w3"], p["b3"], p["conv_w"], p["conv_b"],
                                 data_size)
    # Pre-packed kernel buffers: bf16 weights (halves the dominant W_eff DMA),
    # w1/w2 and b1/b2 consolidated so the kernel issues 5 input DMAs, not 7.
    p["w12_bf16"] = jnp.concatenate([p["w1"], p["w2"]], axis=0).astype(jnp.bfloat16)
    p["b12"] = jnp.stack([p["b1"], p["b2"]], axis=0)           # (2, cond) f32
    p["w_eff_bf16"] = w_eff.astype(jnp.bfloat16)
    p["b_eff"] = b_eff                                          # f32
    return p


def reference_forward(x, p):
    # Pure-JAX f32 reference matching the original PyTorch semantics (unfused).
    h = jnp.maximum(x @ p["w1"] + p["b1"], 0.0)
    h = jnp.maximum(h @ p["w2"] + p["b2"], 0.0)
    h = h @ p["w3"] + p["b3"]
    D = p["data_size"]
    img = h.reshape(-1, 1, D, D)
    out = jax.lax.conv_general_dilated(
        img, p["conv_w"], window_strides=(1, 1), padding="SAME",
        dimension_numbers=("NCHW", "OIHW", "NCHW"))
    return out + p["conv_b"].reshape(1, -1, 1, 1)


if __name__ == "__main__":
    cond_size, data_size, channels, batch = 32, 16, 4, 2

    key = jax.random.PRNGKey(0)
    kp, kx = jax.random.split(key)
    params = init_params(kp, cond_size, data_size, channels)
    x = jax.random.normal(kx, (batch, cond_size), jnp.float32)

    out = cond_vec2img_forward(x, params)
    out = jax.block_until_ready(out)

    ref = reference_forward(x, params)
    assert out.shape == (batch, channels, data_size, data_size), out.shape
    # Tolerance reflects bf16 weight/activation quantization at the MXU inputs
    # (f32 accumulation); the fc3+conv algebraic fold itself is exact to f32
    # rounding.
    np.testing.assert_allclose(np.asarray(out), np.asarray(ref),
                               rtol=4e-2, atol=4e-2)

    print("KERNEL_OK")
</pallas_src>

<mosaic_0001>
module attributes {stable_mosaic.version = 11 : i64} {
  func.func @kernel(%arg0: i32, %arg1: memref<16x32xf32, #tpu.memory_space<vmem>>, %arg2: memref<64x32xbf16, #tpu.memory_space<vmem>>, %arg3: memref<2x32xf32, #tpu.memory_space<vmem>>, %arg4: memref<32x1024xbf16, #tpu.memory_space<vmem>>, %arg5: memref<1x1024xf32, #tpu.memory_space<vmem>>, %arg6: memref<16x1024xf32, #tpu.memory_space<vmem>>) attributes {dimension_semantics = [#tpu.dimension_semantics<parallel>], iteration_bounds = array<i64: 1>, scalar_prefetch = 0 : i64, scratch_operands = 0 : i64, tpu.core_type = #tpu.core_type<tc>, window_params = [{transform_indices = @transform_0, window_bounds = array<i64: 16, 32>}, {pipeline_mode = #tpu.pipeline_mode<synchronous>, transform_indices = @transform_1, window_bounds = array<i64: 64, 32>}, {pipeline_mode = #tpu.pipeline_mode<synchronous>, transform_indices = @transform_2, window_bounds = array<i64: 2, 32>}, {pipeline_mode = #tpu.pipeline_mode<synchronous>, transform_indices = @transform_3, window_bounds = array<i64: 32, 1024>}, {pipeline_mode = #tpu.pipeline_mode<synchronous>, transform_indices = @transform_4, window_bounds = array<i64: 1, 1024>}, {transform_indices = @transform_5, window_bounds = array<i64: 16, 1024>}]} {
    %c0 = arith.constant 0 : index
    %c0_0 = arith.constant 0 : index
    %0 = vector.load %arg2[%c0, %c0_0] : memref<64x32xbf16, #tpu.memory_space<vmem>>, vector<32x32xbf16>
    %c32 = arith.constant 32 : index
    %c0_1 = arith.constant 0 : index
    %1 = vector.load %arg2[%c32, %c0_1] : memref<64x32xbf16, #tpu.memory_space<vmem>>, vector<32x32xbf16>
    %c0_2 = arith.constant 0 : index
    %c0_3 = arith.constant 0 : index
    %2 = vector.load %arg3[%c0_2, %c0_3] : memref<2x32xf32, #tpu.memory_space<vmem>>, vector<1x32xf32>
    %c1 = arith.constant 1 : index
    %c0_4 = arith.constant 0 : index
    %3 = vector.load %arg3[%c1, %c0_4] : memref<2x32xf32, #tpu.memory_space<vmem>>, vector<1x32xf32>
    %c0_5 = arith.constant 0 : index
    %c0_6 = arith.constant 0 : index
    %4 = vector.load %arg1[%c0_5, %c0_6] : memref<16x32xf32, #tpu.memory_space<vmem>>, vector<16x32xf32>
    %5 = arith.truncf %4 : vector<16x32xf32> to vector<16x32xbf16>
    %cst = arith.constant dense<0.000000e+00> : vector<16x32xf32>
    %6 = tpu.matmul %5, %0, %cst {dimension_numbers = #tpu.dot_dimension_numbers<[1], [0], [0], [1], [0, 0, 1, 1], [], []>} : vector<16x32xbf16>, vector<32x32xbf16>, vector<16x32xf32> -> vector<16x32xf32>
    %7 = vector.broadcast %2 : vector<1x32xf32> to vector<16x32xf32>
    %8 = arith.addf %6, %7 : vector<16x32xf32>
    %cst_7 = arith.constant 0.000000e+00 : f32
    %9 = vector.broadcast %cst_7 : f32 to vector<16x32xf32>
    %10 = arith.maximumf %8, %9 : vector<16x32xf32>
    %11 = arith.truncf %10 : vector<16x32xf32> to vector<16x32xbf16>
    %cst_8 = arith.constant dense<0.000000e+00> : vector<16x32xf32>
    %12 = tpu.matmul %11, %1, %cst_8 {dimension_numbers = #tpu.dot_dimension_numbers<[1], [0], [0], [1], [0, 0, 1, 1], [], []>} : vector<16x32xbf16>, vector<32x32xbf16>, vector<16x32xf32> -> vector<16x32xf32>
    %13 = vector.broadcast %3 : vector<1x32xf32> to vector<16x32xf32>
    %14 = arith.addf %12, %13 : vector<16x32xf32>
    %cst_9 = arith.constant 0.000000e+00 : f32
    %15 = vector.broadcast %cst_9 : f32 to vector<16x32xf32>
    %16 = arith.maximumf %14, %15 : vector<16x32xf32>
    %17 = arith.truncf %16 : vector<16x32xf32> to vector<16x32xbf16>
    %c0_10 = arith.constant 0 : index
    %c0_11 = arith.constant 0 : index
    %18 = vector.load %arg4[%c0_10, %c0_11] : memref<32x1024xbf16, #tpu.memory_space<vmem>>, vector<32x1024xbf16>
    %cst_12 = arith.constant dense<0.000000e+00> : vector<16x1024xf32>
    %19 = tpu.matmul %17, %18, %cst_12 {dimension_numbers = #tpu.dot_dimension_numbers<[1], [0], [0], [1], [0, 0, 1, 1], [], []>} : vector<16x32xbf16>, vector<32x1024xbf16>, vector<16x1024xf32> -> vector<16x1024xf32>
    %c0_13 = arith.constant 0 : index
    %c0_14 = arith.constant 0 : index
    %20 = vector.load %arg5[%c0_13, %c0_14] : memref<1x1024xf32, #tpu.memory_space<vmem>>, vector<1x1024xf32>
    %21 = vector.broadcast %20 : vector<1x1024xf32> to vector<16x1024xf32>
    %22 = arith.addf %19, %21 : vector<16x1024xf32>
    %c0_15 = arith.constant 0 : index
    %c0_16 = arith.constant 0 : index
    %23 = vector.load %arg6[%c0_15, %c0_16] : memref<16x1024xf32, #tpu.memory_space<vmem>>, vector<16x1024xf32>
    tpu.vector_store %arg6[%c0_15, %c0_16], %22 {strides = array<i32>} : memref<16x1024xf32, #tpu.memory_space<vmem>>, vector<16x1024xf32>,
    return
  }
  func.func @transform_0(%arg0: i32) -> (i32, i32) {
    %c0_i32 = arith.constant 0 : i32
    %c0_i32_0 = arith.constant 0 : i32
    return %arg0, %c0_i32 : i32, i32
  }
  func.func @transform_1(%arg0: i32) -> (i32, i32) {
    %c0_i32 = arith.constant 0 : i32
    %c0_i32_0 = arith.constant 0 : i32
    %c0_i32_1 = arith.constant 0 : i32
    return %c0_i32, %c0_i32_0 : i32, i32
  }
  func.func @transform_2(%arg0: i32) -> (i32, i32) {
    %c0_i32 = arith.constant 0 : i32
    %c0_i32_0 = arith.constant 0 : i32
    %c0_i32_1 = arith.constant 0 : i32
    return %c0_i32, %c0_i32_0 : i32, i32
  }
  func.func @transform_3(%arg0: i32) -> (i32, i32) {
    %c0_i32 = arith.constant 0 : i32
    %c0_i32_0 = arith.constant 0 : i32
    %c0_i32_1 = arith.constant 0 : i32
    return %c0_i32, %c0_i32_0 : i32, i32
  }
  func.func @transform_4(%arg0: i32) -> (i32, i32) {
    %c0_i32 = arith.constant 0 : i32
    %c0_i32_0 = arith.constant 0 : i32
    %c0_i32_1 = arith.constant 0 : i32
    return %c0_i32, %c0_i32_0 : i32, i32
  }
  func.func @transform_5(%arg0: i32) -> (i32, i32) {
    %c0_i32 = arith.constant 0 : i32
    %c0_i32_0 = arith.constant 0 : i32
    return %arg0, %c0_i32 : i32, i32
  }
}

</mosaic_0001>

<bundles_post_ra>
// kernel: tpu_custom_call.1
= control target key start
LH: loop header
LB: loop body
LE: loop exit
PB: predicated region body
PF: predicated region fallthrough
CT: control target
= control target key end

     0   :  { %10 = vsyncpa [#allocation3], 0  ;;  %s631_s0 = inlined_call_operand.vmem [shape: f32[16,32], index: 0, kind: input, shape index: {}]   ;;  %s632_s1 = inlined_call_operand.vmem [shape: bf16[64,32], index: 1, kind: input, shape index: {}]   ;;  %s633_s2 = inlined_call_operand.vmem [shape: f32[2,32], index: 2, kind: input, shape index: {}]   ;;  %s634_s3 = inlined_call_operand.hbm [shape: bf16[32,1024], index: 3, kind: input, shape index: {}]   ;;  %s635_s4 = inlined_call_operand.vmem [shape: f32[1,1024], index: 4, kind: input, shape index: {}]   ;;  %s636_s5 = inlined_call_operand.hbm [shape: f32[16,1024], index: 5, kind: output, shape index: {}]  }
   0x1   :  { %11 = vsyncpa [#allocation4], 0  ;;  %s22_s20 = sshll.u32 %s634_s3, 4  ;;  %s552_s21 = smov [#allocation2]   ;;  %s23_s20 = int_to_ptr.hbm [resolvable:$true] %s22_s20 }
   0x2   :  { %s24_s22 = sshll.u32 %s552_s21, 4  ;;  %s553_s23 = smov 512   ;;  %s25_s22 = int_to_ptr.vmem [resolvable:$true] %s24_s22 }
   0x3   :  { %s554_s24 = smov 32  }
   0x4   :  { %30 = dma.hbm_to_vmem [thread:$0]  %s23_s20, 2048, %s25_s22, [#allocation3], %s553_s23, %s553_s23, %s554_s24  }
   0x5   :  { %548 = dma.done.wait [#allocation3], 2048  }
   0x6   :  { %549 = vsyncadd [#allocation3], 4294965248  ;;  %v473_v0 = vld [vmem:[%s632_s1 + $0x8] sm:$0xff]  ;;  %v472_v1 = vld [vmem:[%s632_s1] sm:$0xff]  ;;  %vm64_vm0 = vcmask 261120   ;;  %s369_s17 = sshll.u32 %s636_s5, 4  ;;  %s370_s17 = int_to_ptr.hbm [resolvable:$true] %s369_s17 }
   0x7   :  { %74 = vmatpush.bf16.msra.mxu0 %v473_v0  ;;  %v48_v2 = vld [vmem:[%s631_s0] sm:$0xff]  ;;  %v49_v3 = vld [vmem:[%s631_s0 + $0x8] sm:$0xff]  ;;  %v475_v5 = vld [vmem:[%s632_s1 + $0x18] sm:$0xff]  ;;  %s556_s18 = smov 1024   ;;  %s557_s19 = smov 64  }
   0x8   :  { %v50_v4 = vpack.c.bf16 %v49_v3, %v48_v2  ;;  %107 = vmatpush.bf16.msra.mxu1 %v475_v5  ;;  %v474_v6 = vld [vmem:[%s632_s1 + $0x10] sm:$0xff]  ;;  %v498_v8 = vld [vmem:[%s633_s2] ss:$0 sm:$0xff]  ;;  %v442_v15 = vld [vmem:[#allocation2 + $0x48] sm:$0xf] }
   0x9   :  { %v489_v16 = vld [vmem:[#allocation2 + $0x64] sm:$0xf0]  ;;  %v485_v17 = vld [vmem:[#allocation2 + $0x4c] sm:$0xf]  ;;  %v434_v21 = vld [vmem:[#allocation2 + $0x40] sm:$0xf] }
   0xa   :  { %v443_v18 = vor.u32 %v489_v16, %v442_v15  ;;  %v444_v19 = vld [vmem:[#allocation2 + $0x68] sm:$0xf0]  ;;  %v488_v22 = vld [vmem:[#allocation2 + $0x5c] sm:$0xf0]  ;;  %v484_v23 = vld [vmem:[#allocation2 + $0x44] sm:$0xf] }
   0xb   :  { %75 = vmatpush.bf16.msra.mxu0 %v472_v1  ;;  %v447_v20 = vor.u32 %v485_v17, %v444_v19  ;;  %v435_v24 = vor.u32 %v488_v22, %v434_v21  ;;  %v436_v25 = vld [vmem:[#allocation2 + $0x60] sm:$0xf0]  ;;  %v402_v27 = vld [vmem:[#allocation2] sm:$0xf]  ;;  %v410_v32 = vld [vmem:[#allocation2 + $0x8] sm:$0xf] }
   0xc   :  { %108 = vmatpush.bf16.msra.mxu1 %v474_v6  ;;  %v439_v26 = vor.u32 %v484_v23, %v436_v25  ;;  %v480_v28 = vld [vmem:[#allocation2 + $0x1c] sm:$0xf0]  ;;  %v476_v29 = vld [vmem:[#allocation2 + $0x4] sm:$0xf]  ;;  %v481_v33 = vld [vmem:[#allocation2 + $0x24] sm:$0xf0] }
   0xd   :  { %241 = vmatpush.bf16.msra.mxu2 %v435_v24  ;;  %v403_v30 = vor.u32 %v480_v28, %v402_v27  ;;  %v404_v31 = vld [vmem:[#allocation2 + $0x20] sm:$0xf0]  ;;  %v411_v35 = vor.u32 %v481_v33, %v410_v32  ;;  %v477_v36 = vld [vmem:[#allocation2 + $0xc] sm:$0xf]  ;;  %v450_v39 = vld [vmem:[#allocation2 + $0x50] sm:$0xf] }
   0xe   :  { %390 = vmatmul.msk.bf16.vlgmr.msra.gmra.mxu0 %vm64_vm0, %v50_v4  ;;  %255 = vmatpush.bf16.msra.mxu3 %v439_v26  ;;  %v407_v34 = vor.u32 %v476_v29, %v404_v31  ;;  %v412_v37 = vld [vmem:[#allocation2 + $0x28] sm:$0xf0]  ;;  %v490_v40 = vld [vmem:[#allocation2 + $0x6c] sm:$0xf0]  ;;  %v486_v41 = vld [vmem:[#allocation2 + $0x54] sm:$0xf] }
   0xf   :  { %269 = vmatpush.bf16.msrb.mxu0 %v443_v18  ;;  %v415_v38 = vor.u32 %v477_v36, %v412_v37  ;;  %v451_v42 = vor.u32 %v490_v40, %v450_v39  ;;  %v452_v43 = vld [vmem:[#allocation2 + $0x70] sm:$0xf0]  ;;  %v458_v44 = vld [vmem:[#allocation2 + $0x58] sm:$0xf]  ;;  %v487_v48 = vld [vmem:[#allocation2 + $0x5c] sm:$0xf] }
  0x10   :  { %283 = vmatpush.bf16.msrb.mxu1 %v447_v20  ;;  %v491_v45 = vld [vmem:[#allocation2 + $0x74] sm:$0xf0]  ;;  %v455_v46 = vor.u32 %v486_v41, %v452_v43  ;;  %v460_v49 = vld [vmem:[#allocation2 + $0x78] sm:$0xf0]  ;;  %v418_v50 = vld [vmem:[#allocation2 + $0x10] sm:$0xf] }
  0x11   :  { %242 = vmatpush.bf16.msra.mxu2 %v403_v30  ;;  %v459_v47 = vor.u32 %v491_v45, %v458_v44  ;;  %v463_v51 = vor.u32 %v487_v48, %v460_v49  ;;  %v482_v52 = vld [vmem:[#allocation2 + $0x2c] sm:$0xf0]  ;;  %v478_v53 = vld [vmem:[#allocation2 + $0x14] sm:$0xf]  ;;  %v426_v57 = vld [vmem:[#allocation2 + $0x18] sm:$0xf] }
  0x12   :  { %256 = vmatpush.bf16.msra.mxu3 %v407_v34  ;;  %v420_v54 = vld [vmem:[#allocation2 + $0x30] sm:$0xf0]  ;;  %v419_v55 = vor.u32 %v482_v52, %v418_v50  ;;  %v483_v58 = vld [vmem:[#allocation2 + $0x34] sm:$0xf0]  ;;  %v479_v59 = vld [vmem:[#allocation2 + $0x1c] sm:$0xf] }
  0x13   :  { %270 = vmatpush.bf16.msrb.mxu0 %v411_v35  ;;  %v423_v56 = vor.u32 %v478_v53, %v420_v54  ;;  %v427_v60 = vor.u32 %v483_v58, %v426_v57  ;;  %v428_v61 = vld [vmem:[#allocation2 + $0x38] sm:$0xf0]  ;;  %v499_v0 = vld [vmem:[%s633_s2 + $0x1] ss:$0 sm:$0xff] }
  0x14   :  { %284 = vmatpush.bf16.msrb.mxu1 %v415_v38  ;;  %v431_v62 = vor.u32 %v479_v59, %v428_v61 }
  0x15   :  { %297 = vmatpush.bf16.msrb.mxu2 %v451_v42 }
  0x16   :  { %311 = vmatpush.bf16.msrb.mxu3 %v455_v46 }
  0x17   :  { %325 = vmatpush.bf16.msra.mxu0 %v459_v47 }
  0x19   :  { %298 = vmatpush.bf16.msrb.mxu2 %v419_v55 }
  0x1a   :  { %312 = vmatpush.bf16.msrb.mxu3 %v423_v56 }
  0x1b   :  { %326 = vmatpush.bf16.msra.mxu0 %v427_v60 }
  0x8b   :  { %v77_v7 = vpop.f32.mrf.mxu0 }
  0x8c   :  { %v78_v9 = vadd.f32 %v498_v8, %v77_v7  ;;  %v134_v7 = vld [vmem:[%s635_s4] sm:$0xff]  ;;  %s555_s4 = smov [#allocation5]  }
  0x8d   :  { %v137_v15 = vperm.slane %v134_v7, 1  ;;  %v142_v26 = vperm.slane %v134_v7, 6  ;;  %v143_v27 = vperm.slane %v134_v7, 7  ;;  %v140_v34 = vperm.slane %v134_v7, 4  ;;  %s367_s14 = sshll.u32 %s555_s4, 4  ;;  %s368_s14 = int_to_ptr.vmem [resolvable:$true] %s367_s14 }
  0x8e   :  { %v82_v12 = vmax.f32 %v78_v9, 0.0  ;;  %v139_v9 = vperm.slane %v134_v7, 3  ;;  %v141_v35 = vperm.slane %v134_v7, 5 }
  0x93   :  { %v79_v10 = vpop.f32.mrf.mxu0 }
  0x94   :  { %v80_v11 = vadd.f32 %v498_v8, %v79_v10  ;;  %v138_v8 = vperm.slane %v134_v7, 2 }
  0x96   :  { %v83_v13 = vmax.f32 %v80_v11, 0.0 }
  0x98   :  { %v84_v14 = vpack.c.bf16 %v83_v13, %v82_v12 }
  0x9a   :  { %399 = vmatmul.msk.bf16.vlgmr.msra.gmra.mxu1 %vm64_vm0, %v84_v14  ;;  %v136_v14 = vperm.slane %v134_v7, 0 }
  0x9b   :  { %339 = vmatpush.bf16.msra.mxu1 %v463_v51 }
  0x9f   :  { %340 = vmatpush.bf16.msra.mxu1 %v431_v62 }
 0x117   :  { %v110_v63 = vpop.f32.mrf.mxu1 }
 0x118   :  { %v111_v1 = vadd.f32 %v499_v0, %v110_v63 }
 0x11a   :  { %v115_v4 = vmax.f32 %v111_v1, 0.0 }
 0x11f   :  { %v112_v2 = vpop.f32.mrf.mxu1 }
 0x120   :  { %v113_v3 = vadd.f32 %v499_v0, %v112_v2 }
 0x122   :  { %v116_v5 = vmax.f32 %v113_v3, 0.0 }
 0x124   :  { %v117_v6 = vpack.c.bf16 %v116_v5, %v115_v4 }
 0x126   :  { %464 = vmatmul.msk.bf16.vlgmr.msra.gmra.mxu2 %vm64_vm0, %v117_v6  ;;  %465 = vmatmul.msk.bf16.vlgmr.msra.gmra.mxu3 %vm64_vm0, %v117_v6 }
 0x127   :  { %466 = vmatmul.msk.bf16.vlgmr.msrb.gmra.mxu0 %vm64_vm0, %v117_v6  ;;  %467 = vmatmul.msk.bf16.vlgmr.msrb.gmra.mxu1 %vm64_vm0, %v117_v6 }
 0x136   :  { %468 = vmatmul.msk.bf16.vlgmr.msrb.gmra.mxu2 %vm64_vm0, %v117_v6  ;;  %469 = vmatmul.msk.bf16.vlgmr.msrb.gmra.mxu3 %vm64_vm0, %v117_v6 }
 0x137   :  { %470 = vmatmul.msk.bf16.vlgmr.msra.gmra.mxu0 %vm64_vm0, %v117_v6  ;;  %471 = vmatmul.msk.bf16.vlgmr.msra.gmra.mxu1 %vm64_vm0, %v117_v6 }
 0x1a4   :  { %v272_v10 = vpop.f32.mrf.mxu0  ;;  %v286_v11 = vpop.f32.mrf.mxu1 }
 0x1a5   :  { %v273_v12 = vadd.f32 %v272_v10, %v138_v8  ;;  %v287_v13 = vadd.f32 %v286_v11, %v139_v9 }
 0x1a7   :  { %349 = vst [vmem:[#allocation5 + $0x10] sm:$0xff] %v273_v12 }
 0x1a8   :  { %350 = vst [vmem:[#allocation5 + $0x18] sm:$0xff] %v287_v13 }
 0x1a9   :  { %v244_v16 = vpop.f32.mrf.mxu2  ;;  %v258_v17 = vpop.f32.mrf.mxu3 }
 0x1aa   :  { %v245_v18 = vadd.f32 %v244_v16, %v136_v14  ;;  %v259_v19 = vadd.f32 %v258_v17, %v137_v15 }
 0x1ac   :  { %347 = vst [vmem:[#allocation5] sm:$0xff] %v245_v18  ;;  %v274_v20 = vpop.f32.mrf.mxu0  ;;  %v288_v21 = vpop.f32.mrf.mxu1 }
 0x1ad   :  { %348 = vst [vmem:[#allocation5 + $0x8] sm:$0xff] %v259_v19  ;;  %v275_v22 = vadd.f32 %v274_v20, %v138_v8  ;;  %v289_v23 = vadd.f32 %v288_v21, %v139_v9 }
 0x1af   :  { %357 = vst [vmem:[#allocation5 + $0x50] sm:$0xff] %v275_v22 }
 0x1b0   :  { %358 = vst [vmem:[#allocation5 + $0x58] sm:$0xff] %v289_v23 }
 0x1b1   :  { %v246_v24 = vpop.f32.mrf.mxu2  ;;  %v260_v25 = vpop.f32.mrf.mxu3 }
 0x1b2   :  { %v247_v28 = vadd.f32 %v246_v24, %v136_v14  ;;  %v261_v29 = vadd.f32 %v260_v25, %v137_v15 }
 0x1b4   :  { %355 = vst [vmem:[#allocation5 + $0x40] sm:$0xff] %v247_v28  ;;  %v328_v30 = vpop.f32.mrf.mxu0  ;;  %v342_v31 = vpop.f32.mrf.mxu1 }
 0x1b5   :  { %356 = vst [vmem:[#allocation5 + $0x48] sm:$0xff] %v261_v29  ;;  %v329_v32 = vadd.f32 %v328_v30, %v142_v26  ;;  %v343_v33 = vadd.f32 %v342_v31, %v143_v27 }
 0x1b7   :  { %353 = vst [vmem:[#allocation5 + $0x30] sm:$0xff] %v329_v32 }
 0x1b8   :  { %354 = vst [vmem:[#allocation5 + $0x38] sm:$0xff] %v343_v33 }
 0x1b9   :  { %v300_v36 = vpop.f32.mrf.mxu2  ;;  %v314_v37 = vpop.f32.mrf.mxu3 }
 0x1ba   :  { %v301_v38 = vadd.f32 %v300_v36, %v140_v34  ;;  %v315_v39 = vadd.f32 %v314_v37, %v141_v35 }
 0x1bc   :  { %351 = vst [vmem:[#allocation5 + $0x20] sm:$0xff] %v301_v38  ;;  %v330_v40 = vpop.f32.mrf.mxu0  ;;  %v344_v41 = vpop.f32.mrf.mxu1 }
 0x1bd   :  { %352 = vst [vmem:[#allocation5 + $0x28] sm:$0xff] %v315_v39  ;;  %v331_v42 = vadd.f32 %v330_v40, %v142_v26  ;;  %v345_v43 = vadd.f32 %v344_v41, %v143_v27 }
 0x1bf   :  { %361 = vst [vmem:[#allocation5 + $0x70] sm:$0xff] %v331_v42 }
 0x1c0   :  { %362 = vst [vmem:[#allocation5 + $0x78] sm:$0xff] %v345_v43 }
 0x1c1   :  { %v302_v44 = vpop.f32.mrf.mxu2  ;;  %v316_v45 = vpop.f32.mrf.mxu3 }
 0x1c2   :  { %v303_v46 = vadd.f32 %v302_v44, %v140_v34  ;;  %v317_v47 = vadd.f32 %v316_v45, %v141_v35 }
 0x1c4   :  { %359 = vst [vmem:[#allocation5 + $0x60] sm:$0xff] %v303_v46 }
 0x1c5   :  { %360 = vst [vmem:[#allocation5 + $0x68] sm:$0xff] %v317_v47 }
 0x1c6   :  { %375 = dma.vmem_to_hbm [thread:$0]  %s368_s14, 2048, %s370_s17, [#allocation4], %s556_s18, %s556_s18, %s557_s19  }
 0x1c7   :  { %550 = dma.done.wait [#allocation4], 2048  }
 0x1c8   :  { %551 = vsyncadd [#allocation4], 4294965248 }
 0x1c9   :  { %380 = vsyncpa [#allocation3], 1 }
 0x1ca   :  { %381 = vsyncpa [#allocation4], 1 }

</bundles_post_ra>
